<compile_context>
chip_gen: v6e
topology: v6e:2x2x1
jax: 0.10.0
libtpu: 0.0.40
codegen_flags: <defaults>
</compile_context>

<pallas_src>
import jax
import jax.numpy as jnp
from jax import lax
from jax.experimental import pallas as pl
from jax.experimental.pallas import tpu as pltpu


def make_kernel(T, D, H, C):
    def kernel(x_ref, wih_ref, whh_ref, b_ref,
               wattn_ref, battn_ref, wcomb_ref,
               wout_ref, bout_ref,
               score_ref):
        # ---- input projection hoisted out of the recurrence ----
        # One (T, D) @ (D, 4H) MXU matmul + bias broadcast, off the serial path.
        pre_gates = (jnp.dot(x_ref[...], wih_ref[...],
                             preferred_element_type=jnp.float32)
                     + b_ref[...])                            # (T, 4H)

        whh = whh_ref[...]                                    # (H, 4H)

        # Lane mask selecting the cell-candidate ("g") gate columns.
        lane = lax.broadcasted_iota(jnp.int32, (1, 4 * H), 1)
        is_g = jnp.logical_and(lane >= 2 * H, lane < 3 * H)

        # ---- LSTM recurrence: fully unrolled, state carried in vregs ----
        h = jnp.zeros((1, H), jnp.float32)
        c = jnp.zeros((1, H), jnp.float32)
        outs = []
        for t in range(T):                                    # T static & small
            gates = (pre_gates[t:t + 1, :]
                     + jnp.dot(h, whh,
                               preferred_element_type=jnp.float32))  # (1, 4H)
            # Whole-vreg activations (2 EUP pushes) + one VPU select.
            acts = jnp.where(is_g, jnp.tanh(gates), jax.nn.sigmoid(gates))
            # PyTorch LSTM gate order: input, forget, cell(g), output.
            i_g = acts[:, 0 * H:1 * H]
            f_g = acts[:, 1 * H:2 * H]
            g_g = acts[:, 2 * H:3 * H]
            o_g = acts[:, 3 * H:4 * H]
            c = f_g * c + i_g * g_g
            h = o_g * jnp.tanh(c)
            outs.append(h)
        rnn_out = jnp.concatenate(outs, axis=0)               # (T, H), registers

        # ---- attention: tanh(Linear) -> Linear(no bias) -> softmax over time ----
        annotation = jnp.tanh(
            jnp.dot(rnn_out, wattn_ref[...],
                    preferred_element_type=jnp.float32) + battn_ref[...])
        attn_logits = jnp.dot(annotation, wcomb_ref[...],
                              preferred_element_type=jnp.float32)   # (T, H)
        m = jnp.max(attn_logits, axis=0, keepdims=True)
        e = jnp.exp(attn_logits - m)
        attn = e * pl.reciprocal(jnp.sum(e, axis=0, keepdims=True), approx=True)

        # ---- attn_mul: elementwise weight then sum over time ----
        attn_vec = jnp.sum(attn * rnn_out, axis=0, keepdims=True)   # (1, H)

        # TODO(synk): nn.Dropout is identity in eval mode; training-mode dropout
        # (random masking) is intentionally not applied here.

        # ---- final classifier + log_softmax over classes ----
        cls = (jnp.dot(attn_vec, wout_ref[...],
                       preferred_element_type=jnp.float32)
               + bout_ref[...])                               # (1, C)
        m2 = jnp.max(cls, axis=1, keepdims=True)
        s = cls - m2
        lse = jnp.log(jnp.sum(jnp.exp(s), axis=1, keepdims=True))
        score_ref[...] = s - lse

    return kernel


def bilstm_suicide_classifier_forward(x, params):
    """x: [T, D] float32 (sequence of embeddings, batch=1 squeezed)."""
    T, D = x.shape
    H = params["w_hh"].shape[0]
    C = params["w_out"].shape[1]

    vmem = pl.BlockSpec(memory_space=pltpu.MemorySpace.VMEM)
    kernel = make_kernel(T, D, H, C)

    # Rough cost hints so XLA can schedule/overlap this tiny custom call.
    flops = (2 * T * D * 4 * H        # hoisted input projection
             + 2 * T * H * 4 * H      # recurrent matmuls
             + 4 * T * H * H          # attention matmuls
             + 2 * H * C              # classifier
             + 16 * T * H)            # elementwise gate math / pooling
    transcendentals = (T * 5 * H      # gate sigmoid/tanh + tanh(c)
                       + 2 * T * H    # annotation tanh + softmax exp
                       + C + 1)       # log_softmax
    bytes_accessed = 4 * (T * D + D * 4 * H + H * 4 * H + 4 * H
                          + 2 * H * H + H + H * C + C + C)

    return pl.pallas_call(
        kernel,
        out_shape=jax.ShapeDtypeStruct((1, C), jnp.float32),
        in_specs=[vmem] * 9,
        out_specs=vmem,
        cost_estimate=pl.CostEstimate(
            flops=flops,
            transcendentals=transcendentals,
            bytes_accessed=bytes_accessed),
    )(x,
      params["w_ih"], params["w_hh"], params["b_lstm"],
      params["w_attn"], params["b_attn"], params["w_comb"],
      params["w_out"], params["b_out"])


def init_params(key, D, H, C):
    """Deterministic parameter init mirroring PyTorch module shapes.
    LSTM weight_ih_l0: (4H, D), weight_hh_l0: (4H, H), biases (4H,) each.
    Stored transposed for row-major matmuls."""
    ks = jax.random.split(key, 9)
    bound = 1.0 / jnp.sqrt(H)

    def u(k, shape):
        return jax.random.uniform(k, shape, jnp.float32, -bound, bound)

    w_ih = u(ks[0], (D, 4 * H))          # transposed weight_ih_l0
    w_hh = u(ks[1], (H, 4 * H))          # transposed weight_hh_l0
    b_lstm = u(ks[2], (1, 4 * H)) + u(ks[3], (1, 4 * H))   # b_ih + b_hh
    w_attn = u(ks[4], (H, H))            # sc_attn.weight^T
    b_attn = u(ks[5], (1, H))            # sc_attn.bias
    w_comb = u(ks[6], (H, H))            # sc_attn_combine.weight^T (no bias)
    w_out = u(ks[7], (H, C))             # hidden_cat_to_sc_level.weight^T
    b_out = u(ks[8], (1, C))             # hidden_cat_to_sc_level.bias
    return dict(w_ih=w_ih, w_hh=w_hh, b_lstm=b_lstm,
                w_attn=w_attn, b_attn=b_attn, w_comb=w_comb,
                w_out=w_out, b_out=b_out)


def reference_forward(x, p):
    """Pure-JAX reference (mirrors the PyTorch forward) for a sanity check."""
    T, D = x.shape
    H = p["w_hh"].shape[0]

    def step(carry, x_t):
        h, c = carry
        gates = x_t[None, :] @ p["w_ih"] + h @ p["w_hh"] + p["b_lstm"]
        i = jax.nn.sigmoid(gates[:, 0 * H:1 * H])
        f = jax.nn.sigmoid(gates[:, 1 * H:2 * H])
        g = jnp.tanh(gates[:, 2 * H:3 * H])
        o = jax.nn.sigmoid(gates[:, 3 * H:4 * H])
        c = f * c + i * g
        h = o * jnp.tanh(c)
        return (h, c), h[0]

    (_, _), outs = lax.scan(step, (jnp.zeros((1, H)), jnp.zeros((1, H))), x)
    ann = jnp.tanh(outs @ p["w_attn"] + p["b_attn"])
    attn = jax.nn.softmax(ann @ p["w_comb"], axis=0)
    vec = jnp.sum(attn * outs, axis=0, keepdims=True)
    cls = vec @ p["w_out"] + p["b_out"]
    return jax.nn.log_softmax(cls, axis=1)


if __name__ == "__main__":
    T, D, H, C = 8, 16, 32, 4      # seq=8, sc_input_dim=16, hidden_dim=32, class_num=4
    key = jax.random.PRNGKey(0)
    k_x, k_p = jax.random.split(key)
    x = jax.random.normal(k_x, (T, D), jnp.float32)   # sequence of embeddings, batch=1
    params = init_params(k_p, D, H, C)

    score = bilstm_suicide_classifier_forward(x, params)
    score = jax.block_until_ready(score)

    ref = reference_forward(x, params)
    assert score.shape == (1, C)
    assert jnp.all(jnp.isfinite(score))
    assert jnp.allclose(score, ref, atol=1e-4, rtol=1e-4)
    print("KERNEL_OK")
</pallas_src>

<mosaic_0001>
module attributes {stable_mosaic.version = 11 : i64} {
  func.func @kernel(%arg0: memref<8x16xf32, #tpu.memory_space<vmem>>, %arg1: memref<16x128xf32, #tpu.memory_space<vmem>>, %arg2: memref<32x128xf32, #tpu.memory_space<vmem>>, %arg3: memref<1x128xf32, #tpu.memory_space<vmem>>, %arg4: memref<32x32xf32, #tpu.memory_space<vmem>>, %arg5: memref<1x32xf32, #tpu.memory_space<vmem>>, %arg6: memref<32x32xf32, #tpu.memory_space<vmem>>, %arg7: memref<32x4xf32, #tpu.memory_space<vmem>>, %arg8: memref<1x4xf32, #tpu.memory_space<vmem>>, %arg9: memref<1x4xf32, #tpu.memory_space<vmem>>) attributes {dimension_semantics = [], scalar_prefetch = 0 : i64, scratch_operands = 0 : i64, tpu.core_type = #tpu.core_type<tc>} {
    %c0 = arith.constant 0 : index
    %c0_0 = arith.constant 0 : index
    %0 = vector.load %arg0[%c0, %c0_0] : memref<8x16xf32, #tpu.memory_space<vmem>>, vector<8x16xf32>
    %c0_1 = arith.constant 0 : index
    %c0_2 = arith.constant 0 : index
    %1 = vector.load %arg1[%c0_1, %c0_2] : memref<16x128xf32, #tpu.memory_space<vmem>>, vector<16x128xf32>
    %cst = arith.constant dense<0.000000e+00> : vector<8x128xf32>
    %2 = tpu.matmul %0, %1, %cst {dimension_numbers = #tpu.dot_dimension_numbers<[1], [0], [0], [1], [0, 0, 1, 1], [], []>} : vector<8x16xf32>, vector<16x128xf32>, vector<8x128xf32> -> vector<8x128xf32>
    %c0_3 = arith.constant 0 : index
    %c0_4 = arith.constant 0 : index
    %3 = vector.load %arg3[%c0_3, %c0_4] : memref<1x128xf32, #tpu.memory_space<vmem>>, vector<1x128xf32>
    %4 = vector.broadcast %3 : vector<1x128xf32> to vector<8x128xf32>
    %5 = arith.addf %2, %4 : vector<8x128xf32>
    %c0_5 = arith.constant 0 : index
    %c0_6 = arith.constant 0 : index
    %6 = vector.load %arg2[%c0_5, %c0_6] : memref<32x128xf32, #tpu.memory_space<vmem>>, vector<32x128xf32>
    %7 = tpu.iota {dimensions = array<i32: 1>} : vector<1x128xi32>
    %c64_i32 = arith.constant 64 : i32
    %8 = vector.broadcast %c64_i32 : i32 to vector<1x128xi32>
    %9 = arith.cmpi sge, %7, %8 : vector<1x128xi32>
    %c96_i32 = arith.constant 96 : i32
    %10 = vector.broadcast %c96_i32 : i32 to vector<1x128xi32>
    %11 = arith.cmpi slt, %7, %10 : vector<1x128xi32>
    %12 = arith.andi %9, %11 : vector<1x128xi1>
    %cst_7 = arith.constant 0.000000e+00 : f32
    %13 = vector.broadcast %cst_7 : f32 to vector<1x32xf32>
    %cst_8 = arith.constant 0.000000e+00 : f32
    %14 = vector.broadcast %cst_8 : f32 to vector<1x32xf32>
    %15 = vector.extract_strided_slice %5 {offsets = [0, 0], sizes = [1, 128], strides = [1, 1]} : vector<8x128xf32> to vector<1x128xf32>
    %cst_9 = arith.constant dense<0.000000e+00> : vector<1x128xf32>
    %16 = tpu.matmul %13, %6, %cst_9 {dimension_numbers = #tpu.dot_dimension_numbers<[1], [0], [0], [1], [0, 0, 1, 1], [], []>} : vector<1x32xf32>, vector<32x128xf32>, vector<1x128xf32> -> vector<1x128xf32>
    %17 = arith.addf %15, %16 : vector<1x128xf32>
    %18 = math.tanh %17 : vector<1x128xf32>
    %19 = arith.negf %17 : vector<1x128xf32>
    %20 = math.exp %19 : vector<1x128xf32>
    %cst_10 = arith.constant 1.000000e+00 : f32
    %21 = vector.broadcast %cst_10 : f32 to vector<1x128xf32>
    %22 = arith.addf %21, %20 : vector<1x128xf32>
    %23 = arith.divf %21, %22 : vector<1x128xf32>
    %24 = arith.select %12, %18, %23 : vector<1x128xi1>, vector<1x128xf32>
    %25 = vector.extract_strided_slice %24 {offsets = [0, 0], sizes = [1, 32], strides = [1, 1]} : vector<1x128xf32> to vector<1x32xf32>
    %26 = vector.extract_strided_slice %24 {offsets = [0, 32], sizes = [1, 32], strides = [1, 1]} : vector<1x128xf32> to vector<1x32xf32>
    %27 = vector.extract_strided_slice %24 {offsets = [0, 64], sizes = [1, 32], strides = [1, 1]} : vector<1x128xf32> to vector<1x32xf32>
    %28 = vector.extract_strided_slice %24 {offsets = [0, 96], sizes = [1, 32], strides = [1, 1]} : vector<1x128xf32> to vector<1x32xf32>
    %29 = arith.mulf %26, %14 : vector<1x32xf32>
    %30 = arith.mulf %25, %27 : vector<1x32xf32>
    %31 = arith.addf %29, %30 : vector<1x32xf32>
    %32 = math.tanh %31 : vector<1x32xf32>
    %33 = arith.mulf %28, %32 : vector<1x32xf32>
    %34 = vector.extract_strided_slice %5 {offsets = [1, 0], sizes = [1, 128], strides = [1, 1]} : vector<8x128xf32> to vector<1x128xf32>
    %cst_11 = arith.constant dense<0.000000e+00> : vector<1x128xf32>
    %35 = tpu.matmul %33, %6, %cst_11 {dimension_numbers = #tpu.dot_dimension_numbers<[1], [0], [0], [1], [0, 0, 1, 1], [], []>} : vector<1x32xf32>, vector<32x128xf32>, vector<1x128xf32> -> vector<1x128xf32>
    %36 = arith.addf %34, %35 : vector<1x128xf32>
    %37 = math.tanh %36 : vector<1x128xf32>
    %38 = arith.negf %36 : vector<1x128xf32>
    %39 = math.exp %38 : vector<1x128xf32>
    %cst_12 = arith.constant 1.000000e+00 : f32
    %40 = vector.broadcast %cst_12 : f32 to vector<1x128xf32>
    %41 = arith.addf %40, %39 : vector<1x128xf32>
    %42 = arith.divf %40, %41 : vector<1x128xf32>
    %43 = arith.select %12, %37, %42 : vector<1x128xi1>, vector<1x128xf32>
    %44 = vector.extract_strided_slice %43 {offsets = [0, 0], sizes = [1, 32], strides = [1, 1]} : vector<1x128xf32> to vector<1x32xf32>
    %45 = vector.extract_strided_slice %43 {offsets = [0, 32], sizes = [1, 32], strides = [1, 1]} : vector<1x128xf32> to vector<1x32xf32>
    %46 = vector.extract_strided_slice %43 {offsets = [0, 64], sizes = [1, 32], strides = [1, 1]} : vector<1x128xf32> to vector<1x32xf32>
    %47 = vector.extract_strided_slice %43 {offsets = [0, 96], sizes = [1, 32], strides = [1, 1]} : vector<1x128xf32> to vector<1x32xf32>
    %48 = arith.mulf %45, %31 : vector<1x32xf32>
    %49 = arith.mulf %44, %46 : vector<1x32xf32>
    %50 = arith.addf %48, %49 : vector<1x32xf32>
    %51 = math.tanh %50 : vector<1x32xf32>
    %52 = arith.mulf %47, %51 : vector<1x32xf32>
    %53 = vector.extract_strided_slice %5 {offsets = [2, 0], sizes = [1, 128], strides = [1, 1]} : vector<8x128xf32> to vector<1x128xf32>
    %cst_13 = arith.constant dense<0.000000e+00> : vector<1x128xf32>
    %54 = tpu.matmul %52, %6, %cst_13 {dimension_numbers = #tpu.dot_dimension_numbers<[1], [0], [0], [1], [0, 0, 1, 1], [], []>} : vector<1x32xf32>, vector<32x128xf32>, vector<1x128xf32> -> vector<1x128xf32>
    %55 = arith.addf %53, %54 : vector<1x128xf32>
    %56 = math.tanh %55 : vector<1x128xf32>
    %57 = arith.negf %55 : vector<1x128xf32>
    %58 = math.exp %57 : vector<1x128xf32>
    %cst_14 = arith.constant 1.000000e+00 : f32
    %59 = vector.broadcast %cst_14 : f32 to vector<1x128xf32>
    %60 = arith.addf %59, %58 : vector<1x128xf32>
    %61 = arith.divf %59, %60 : vector<1x128xf32>
    %62 = arith.select %12, %56, %61 : vector<1x128xi1>, vector<1x128xf32>
    %63 = vector.extract_strided_slice %62 {offsets = [0, 0], sizes = [1, 32], strides = [1, 1]} : vector<1x128xf32> to vector<1x32xf32>
    %64 = vector.extract_strided_slice %62 {offsets = [0, 32], sizes = [1, 32], strides = [1, 1]} : vector<1x128xf32> to vector<1x32xf32>
    %65 = vector.extract_strided_slice %62 {offsets = [0, 64], sizes = [1, 32], strides = [1, 1]} : vector<1x128xf32> to vector<1x32xf32>
    %66 = vector.extract_strided_slice %62 {offsets = [0, 96], sizes = [1, 32], strides = [1, 1]} : vector<1x128xf32> to vector<1x32xf32>
    %67 = arith.mulf %64, %50 : vector<1x32xf32>
    %68 = arith.mulf %63, %65 : vector<1x32xf32>
    %69 = arith.addf %67, %68 : vector<1x32xf32>
    %70 = math.tanh %69 : vector<1x32xf32>
    %71 = arith.mulf %66, %70 : vector<1x32xf32>
    %72 = vector.extract_strided_slice %5 {offsets = [3, 0], sizes = [1, 128], strides = [1, 1]} : vector<8x128xf32> to vector<1x128xf32>
    %cst_15 = arith.constant dense<0.000000e+00> : vector<1x128xf32>
    %73 = tpu.matmul %71, %6, %cst_15 {dimension_numbers = #tpu.dot_dimension_numbers<[1], [0], [0], [1], [0, 0, 1, 1], [], []>} : vector<1x32xf32>, vector<32x128xf32>, vector<1x128xf32> -> vector<1x128xf32>
    %74 = arith.addf %72, %73 : vector<1x128xf32>
    %75 = math.tanh %74 : vector<1x128xf32>
    %76 = arith.negf %74 : vector<1x128xf32>
    %77 = math.exp %76 : vector<1x128xf32>
    %cst_16 = arith.constant 1.000000e+00 : f32
    %78 = vector.broadcast %cst_16 : f32 to vector<1x128xf32>
    %79 = arith.addf %78, %77 : vector<1x128xf32>
    %80 = arith.divf %78, %79 : vector<1x128xf32>
    %81 = arith.select %12, %75, %80 : vector<1x128xi1>, vector<1x128xf32>
    %82 = vector.extract_strided_slice %81 {offsets = [0, 0], sizes = [1, 32], strides = [1, 1]} : vector<1x128xf32> to vector<1x32xf32>
    %83 = vector.extract_strided_slice %81 {offsets = [0, 32], sizes = [1, 32], strides = [1, 1]} : vector<1x128xf32> to vector<1x32xf32>
    %84 = vector.extract_strided_slice %81 {offsets = [0, 64], sizes = [1, 32], strides = [1, 1]} : vector<1x128xf32> to vector<1x32xf32>
    %85 = vector.extract_strided_slice %81 {offsets = [0, 96], sizes = [1, 32], strides = [1, 1]} : vector<1x128xf32> to vector<1x32xf32>
    %86 = arith.mulf %83, %69 : vector<1x32xf32>
    %87 = arith.mulf %82, %84 : vector<1x32xf32>
    %88 = arith.addf %86, %87 : vector<1x32xf32>
    %89 = math.tanh %88 : vector<1x32xf32>
    %90 = arith.mulf %85, %89 : vector<1x32xf32>
    %91 = vector.extract_strided_slice %5 {offsets = [4, 0], sizes = [1, 128], strides = [1, 1]} : vector<8x128xf32> to vector<1x128xf32>
    %cst_17 = arith.constant dense<0.000000e+00> : vector<1x128xf32>
    %92 = tpu.matmul %90, %6, %cst_17 {dimension_numbers = #tpu.dot_dimension_numbers<[1], [0], [0], [1], [0, 0, 1, 1], [], []>} : vector<1x32xf32>, vector<32x128xf32>, vector<1x128xf32> -> vector<1x128xf32>
    %93 = arith.addf %91, %92 : vector<1x128xf32>
    %94 = math.tanh %93 : vector<1x128xf32>
    %95 = arith.negf %93 : vector<1x128xf32>
    %96 = math.exp %95 : vector<1x128xf32>
    %cst_18 = arith.constant 1.000000e+00 : f32
    %97 = vector.broadcast %cst_18 : f32 to vector<1x128xf32>
    %98 = arith.addf %97, %96 : vector<1x128xf32>
    %99 = arith.divf %97, %98 : vector<1x128xf32>
    %100 = arith.select %12, %94, %99 : vector<1x128xi1>, vector<1x128xf32>
    %101 = vector.extract_strided_slice %100 {offsets = [0, 0], sizes = [1, 32], strides = [1, 1]} : vector<1x128xf32> to vector<1x32xf32>
    %102 = vector.extract_strided_slice %100 {offsets = [0, 32], sizes = [1, 32], strides = [1, 1]} : vector<1x128xf32> to vector<1x32xf32>
    %103 = vector.extract_strided_slice %100 {offsets = [0, 64], sizes = [1, 32], strides = [1, 1]} : vector<1x128xf32> to vector<1x32xf32>
    %104 = vector.extract_strided_slice %100 {offsets = [0, 96], sizes = [1, 32], strides = [1, 1]} : vector<1x128xf32> to vector<1x32xf32>
    %105 = arith.mulf %102, %88 : vector<1x32xf32>
    %106 = arith.mulf %101, %103 : vector<1x32xf32>
    %107 = arith.addf %105, %106 : vector<1x32xf32>
    %108 = math.tanh %107 : vector<1x32xf32>
    %109 = arith.mulf %104, %108 : vector<1x32xf32>
    %110 = vector.extract_strided_slice %5 {offsets = [5, 0], sizes = [1, 128], strides = [1, 1]} : vector<8x128xf32> to vector<1x128xf32>
    %cst_19 = arith.constant dense<0.000000e+00> : vector<1x128xf32>
    %111 = tpu.matmul %109, %6, %cst_19 {dimension_numbers = #tpu.dot_dimension_numbers<[1], [0], [0], [1], [0, 0, 1, 1], [], []>} : vector<1x32xf32>, vector<32x128xf32>, vector<1x128xf32> -> vector<1x128xf32>
    %112 = arith.addf %110, %111 : vector<1x128xf32>
    %113 = math.tanh %112 : vector<1x128xf32>
    %114 = arith.negf %112 : vector<1x128xf32>
    %115 = math.exp %114 : vector<1x128xf32>
    %cst_20 = arith.constant 1.000000e+00 : f32
    %116 = vector.broadcast %cst_20 : f32 to vector<1x128xf32>
    %117 = arith.addf %116, %115 : vector<1x128xf32>
    %118 = arith.divf %116, %117 : vector<1x128xf32>
    %119 = arith.select %12, %113, %118 : vector<1x128xi1>, vector<1x128xf32>
    %120 = vector.extract_strided_slice %119 {offsets = [0, 0], sizes = [1, 32], strides = [1, 1]} : vector<1x128xf32> to vector<1x32xf32>
    %121 = vector.extract_strided_slice %119 {offsets = [0, 32], sizes = [1, 32], strides = [1, 1]} : vector<1x128xf32> to vector<1x32xf32>
    %122 = vector.extract_strided_slice %119 {offsets = [0, 64], sizes = [1, 32], strides = [1, 1]} : vector<1x128xf32> to vector<1x32xf32>
    %123 = vector.extract_strided_slice %119 {offsets = [0, 96], sizes = [1, 32], strides = [1, 1]} : vector<1x128xf32> to vector<1x32xf32>
    %124 = arith.mulf %121, %107 : vector<1x32xf32>
    %125 = arith.mulf %120, %122 : vector<1x32xf32>
    %126 = arith.addf %124, %125 : vector<1x32xf32>
    %127 = math.tanh %126 : vector<1x32xf32>
    %128 = arith.mulf %123, %127 : vector<1x32xf32>
    %129 = vector.extract_strided_slice %5 {offsets = [6, 0], sizes = [1, 128], strides = [1, 1]} : vector<8x128xf32> to vector<1x128xf32>
    %cst_21 = arith.constant dense<0.000000e+00> : vector<1x128xf32>
    %130 = tpu.matmul %128, %6, %cst_21 {dimension_numbers = #tpu.dot_dimension_numbers<[1], [0], [0], [1], [0, 0, 1, 1], [], []>} : vector<1x32xf32>, vector<32x128xf32>, vector<1x128xf32> -> vector<1x128xf32>
    %131 = arith.addf %129, %130 : vector<1x128xf32>
    %132 = math.tanh %131 : vector<1x128xf32>
    %133 = arith.negf %131 : vector<1x128xf32>
    %134 = math.exp %133 : vector<1x128xf32>
    %cst_22 = arith.constant 1.000000e+00 : f32
    %135 = vector.broadcast %cst_22 : f32 to vector<1x128xf32>
    %136 = arith.addf %135, %134 : vector<1x128xf32>
    %137 = arith.divf %135, %136 : vector<1x128xf32>
    %138 = arith.select %12, %132, %137 : vector<1x128xi1>, vector<1x128xf32>
    %139 = vector.extract_strided_slice %138 {offsets = [0, 0], sizes = [1, 32], strides = [1, 1]} : vector<1x128xf32> to vector<1x32xf32>
    %140 = vector.extract_strided_slice %138 {offsets = [0, 32], sizes = [1, 32], strides = [1, 1]} : vector<1x128xf32> to vector<1x32xf32>
    %141 = vector.extract_strided_slice %138 {offsets = [0, 64], sizes = [1, 32], strides = [1, 1]} : vector<1x128xf32> to vector<1x32xf32>
    %142 = vector.extract_strided_slice %138 {offsets = [0, 96], sizes = [1, 32], strides = [1, 1]} : vector<1x128xf32> to vector<1x32xf32>
    %143 = arith.mulf %140, %126 : vector<1x32xf32>
    %144 = arith.mulf %139, %141 : vector<1x32xf32>
    %145 = arith.addf %143, %144 : vector<1x32xf32>
    %146 = math.tanh %145 : vector<1x32xf32>
    %147 = arith.mulf %142, %146 : vector<1x32xf32>
    %148 = vector.extract_strided_slice %5 {offsets = [7, 0], sizes = [1, 128], strides = [1, 1]} : vector<8x128xf32> to vector<1x128xf32>
    %cst_23 = arith.constant dense<0.000000e+00> : vector<1x128xf32>
    %149 = tpu.matmul %147, %6, %cst_23 {dimension_numbers = #tpu.dot_dimension_numbers<[1], [0], [0], [1], [0, 0, 1, 1], [], []>} : vector<1x32xf32>, vector<32x128xf32>, vector<1x128xf32> -> vector<1x128xf32>
    %150 = arith.addf %148, %149 : vector<1x128xf32>
    %151 = math.tanh %150 : vector<1x128xf32>
    %152 = arith.negf %150 : vector<1x128xf32>
    %153 = math.exp %152 : vector<1x128xf32>
    %cst_24 = arith.constant 1.000000e+00 : f32
    %154 = vector.broadcast %cst_24 : f32 to vector<1x128xf32>
    %155 = arith.addf %154, %153 : vector<1x128xf32>
    %156 = arith.divf %154, %155 : vector<1x128xf32>
    %157 = arith.select %12, %151, %156 : vector<1x128xi1>, vector<1x128xf32>
    %158 = vector.extract_strided_slice %157 {offsets = [0, 0], sizes = [1, 32], strides = [1, 1]} : vector<1x128xf32> to vector<1x32xf32>
    %159 = vector.extract_strided_slice %157 {offsets = [0, 32], sizes = [1, 32], strides = [1, 1]} : vector<1x128xf32> to vector<1x32xf32>
    %160 = vector.extract_strided_slice %157 {offsets = [0, 64], sizes = [1, 32], strides = [1, 1]} : vector<1x128xf32> to vector<1x32xf32>
    %161 = vector.extract_strided_slice %157 {offsets = [0, 96], sizes = [1, 32], strides = [1, 1]} : vector<1x128xf32> to vector<1x32xf32>
    %162 = arith.mulf %159, %145 : vector<1x32xf32>
    %163 = arith.mulf %158, %160 : vector<1x32xf32>
    %164 = arith.addf %162, %163 : vector<1x32xf32>
    %165 = math.tanh %164 : vector<1x32xf32>
    %166 = arith.mulf %161, %165 : vector<1x32xf32>
    %167 = tpu.concatenate %33, %52, %71, %90, %109, %128, %147, %166 in 0 : vector<1x32xf32>, vector<1x32xf32>, vector<1x32xf32>, vector<1x32xf32>, vector<1x32xf32>, vector<1x32xf32>, vector<1x32xf32>, vector<1x32xf32> -> vector<8x32xf32>
    %c0_25 = arith.constant 0 : index
    %c0_26 = arith.constant 0 : index
    %168 = vector.load %arg4[%c0_25, %c0_26] : memref<32x32xf32, #tpu.memory_space<vmem>>, vector<32x32xf32>
    %cst_27 = arith.constant dense<0.000000e+00> : vector<8x32xf32>
    %169 = tpu.matmul %167, %168, %cst_27 {dimension_numbers = #tpu.dot_dimension_numbers<[1], [0], [0], [1], [0, 0, 1, 1], [], []>} : vector<8x32xf32>, vector<32x32xf32>, vector<8x32xf32> -> vector<8x32xf32>
    %c0_28 = arith.constant 0 : index
    %c0_29 = arith.constant 0 : index
    %170 = vector.load %arg5[%c0_28, %c0_29] : memref<1x32xf32, #tpu.memory_space<vmem>>, vector<1x32xf32>
    %171 = vector.broadcast %170 : vector<1x32xf32> to vector<8x32xf32>
    %172 = arith.addf %169, %171 : vector<8x32xf32>
    %173 = math.tanh %172 : vector<8x32xf32>
    %c0_30 = arith.constant 0 : index
    %c0_31 = arith.constant 0 : index
    %174 = vector.load %arg6[%c0_30, %c0_31] : memref<32x32xf32, #tpu.memory_space<vmem>>, vector<32x32xf32>
    %cst_32 = arith.constant dense<0.000000e+00> : vector<8x32xf32>
    %175 = tpu.matmul %173, %174, %cst_32 {dimension_numbers = #tpu.dot_dimension_numbers<[1], [0], [0], [1], [0, 0, 1, 1], [], []>} : vector<8x32xf32>, vector<32x32xf32>, vector<8x32xf32> -> vector<8x32xf32>
    %cst_33 = arith.constant dense<0xFF800000> : vector<32xf32>
    %176 = vector.multi_reduction <maximumf>, %175, %cst_33 [0] : vector<8x32xf32> to vector<32xf32>
    %177 = vector.shape_cast %176 : vector<32xf32> to vector<1x32xf32>
    %178 = vector.broadcast %177 : vector<1x32xf32> to vector<8x32xf32>
    %179 = arith.subf %175, %178 : vector<8x32xf32>
    %180 = math.exp %179 : vector<8x32xf32>
    %cst_34 = arith.constant dense<0.000000e+00> : vector<32xf32>
    %181 = vector.multi_reduction <add>, %180, %cst_34 [0] : vector<8x32xf32> to vector<32xf32>
    %182 = vector.shape_cast %181 : vector<32xf32> to vector<1x32xf32>
    %183 = tpu.reciprocal %182 {approx = true} : vector<1x32xf32> -> vector<1x32xf32>
    %184 = vector.broadcast %183 : vector<1x32xf32> to vector<8x32xf32>
    %185 = arith.mulf %180, %184 : vector<8x32xf32>
    %186 = arith.mulf %185, %167 : vector<8x32xf32>
    %cst_35 = arith.constant dense<0.000000e+00> : vector<32xf32>
    %187 = vector.multi_reduction <add>, %186, %cst_35 [0] : vector<8x32xf32> to vector<32xf32>
    %188 = vector.shape_cast %187 : vector<32xf32> to vector<1x32xf32>
    %c0_36 = arith.constant 0 : index
    %c0_37 = arith.constant 0 : index
    %189 = vector.load %arg7[%c0_36, %c0_37] : memref<32x4xf32, #tpu.memory_space<vmem>>, vector<32x4xf32>
    %cst_38 = arith.constant dense<0.000000e+00> : vector<1x4xf32>
    %190 = tpu.matmul %188, %189, %cst_38 {dimension_numbers = #tpu.dot_dimension_numbers<[1], [0], [0], [1], [0, 0, 1, 1], [], []>} : vector<1x32xf32>, vector<32x4xf32>, vector<1x4xf32> -> vector<1x4xf32>
    %c0_39 = arith.constant 0 : index
    %c0_40 = arith.constant 0 : index
    %191 = vector.load %arg8[%c0_39, %c0_40] : memref<1x4xf32, #tpu.memory_space<vmem>>, vector<1x4xf32>
    %192 = arith.addf %190, %191 : vector<1x4xf32>
    %cst_41 = arith.constant dense<0xFF800000> : vector<1xf32>
    %193 = vector.multi_reduction <maximumf>, %192, %cst_41 [1] : vector<1x4xf32> to vector<1xf32>
    %194 = vector.shape_cast %193 : vector<1xf32> to vector<1x1xf32>
    %195 = vector.broadcast %194 : vector<1x1xf32> to vector<1x4xf32>
    %196 = arith.subf %192, %195 : vector<1x4xf32>
    %197 = math.exp %196 : vector<1x4xf32>
    %cst_42 = arith.constant dense<0.000000e+00> : vector<1xf32>
    %198 = vector.multi_reduction <add>, %197, %cst_42 [1] : vector<1x4xf32> to vector<1xf32>
    %199 = vector.shape_cast %198 : vector<1xf32> to vector<1x1xf32>
    %200 = math.log %199 : vector<1x1xf32>
    %201 = vector.broadcast %200 : vector<1x1xf32> to vector<1x4xf32>
    %202 = arith.subf %196, %201 : vector<1x4xf32>
    %c0_43 = arith.constant 0 : index
    %c0_44 = arith.constant 0 : index
    %203 = vector.load %arg9[%c0_43, %c0_44] : memref<1x4xf32, #tpu.memory_space<vmem>>, vector<1x4xf32>
    tpu.vector_store %arg9[%c0_43, %c0_44], %202 {strides = array<i32>} : memref<1x4xf32, #tpu.memory_space<vmem>>, vector<1x4xf32>,
    return
  }
}

</mosaic_0001>

<bundles_post_ra>
// kernel: tpu_custom_call.1
= control target key start
LH: loop header
LB: loop body
LE: loop exit
PB: predicated region body
PF: predicated region fallthrough
CT: control target
= control target key end

     0   :  { %14 = vsyncpa [#allocation3], 0  ;;  %s2060_s0 = inlined_call_operand.hbm [shape: f32[8,16], index: 0, kind: input, shape index: {}]   ;;  %s2061_s1 = inlined_call_operand.hbm [shape: f32[16,128], index: 1, kind: input, shape index: {}]   ;;  %s2062_s2 = inlined_call_operand.vmem [shape: f32[32,128], index: 2, kind: input, shape index: {}]   ;;  %s2063_s3 = inlined_call_operand.vmem [shape: f32[1,128], index: 3, kind: input, shape index: {}]   ;;  %s2064_s4 = inlined_call_operand.hbm [shape: f32[32,32], index: 4, kind: input, shape index: {}]   ;;  %s2065_s5 = inlined_call_operand.vmem [shape: f32[1,32], index: 5, kind: input, shape index: {}]   ;;  %s2066_s6 = inlined_call_operand.hbm [shape: f32[32,32], index: 6, kind: input, shape index: {}]   ;;  %s2067_s7 = inlined_call_operand.vmem [shape: f32[32,4], index: 7, kind: input, shape index: {}]   ;;  %s2068_s8 = inlined_call_operand.vmem [shape: f32[1,4], index: 8, kind: input, shape index: {}]   ;;  %s2069_s9 = inlined_call_operand.hbm [shape: f32[1,4], index: 9, kind: output, shape index: {}]  }
   0x1   :  { %15 = vsyncpa [#allocation6], 0 }
   0x2   :  { %16 = vsyncpa [#allocation9], 0 }
   0x3   :  { %17 = vsyncpa [#allocation4], 0  ;;  %s1749_s30 = smov [#allocation5]  }
   0x4   :  { %s33_s10 = sshll.u32 %s1749_s30, 4  ;;  %s34_s10 = int_to_ptr.vmem [resolvable:$true] %s33_s10 }
   0x5   :  { %s1649_s11 = scalar_lea.vmem %s34_s10, 256  ;;  %p1654_p1 = scmp.lt.s32.totalorder %s34_s10, %s34_s10 }
   0x6   :  { %p1650_p0 = scmp.ne.s32.totalorder %s34_s10, %s1649_s11  ;;  %p1655_p2 = scmp.lt.s32.totalorder %s1649_s11, %s1649_s11 }
   0x8   :  { %p1656_p3 = por %p1655_p2, %p1654_p1 }
   0xa   :  { %p1657_p4 = pnand %p1656_p3, %p1650_p0 }
   0xc   :  { %1660 = shalt.err (!%p1657_p4)
}
   0xd   :  { %s1750_s12 = smov 128   ;;  %s1751_s13 = smov 8  }
   0xe   :  { %39 = dma.hbm_to_vmem [thread:$0]  %s2061_s1, 256, %s34_s10, [#allocation6], %s1750_s12, %s1750_s12, %s1751_s13  }
   0xf   :  { %s1752_s16 = smov [#allocation2]   ;;  %s1753_s18 = smov [#allocation7]  }
  0x10   :  { %s24_s17 = sshll.u32 %s1752_s16, 4  ;;  %s49_s19 = sshll.u32 %s1753_s18, 4  ;;  %s25_s17 = int_to_ptr.vmem [resolvable:$true] %s24_s17  ;;  %s50_s19 = int_to_ptr.vmem [resolvable:$true] %s49_s19 }
  0x11   :  { %s1669_s20 = scalar_lea.vmem %s25_s17, 128  ;;  %p1674_p6 = scmp.lt.s32.totalorder %s25_s17, %s25_s17 }
  0x12   :  { %p1670_p5 = scmp.ne.s32.totalorder %s25_s17, %s1669_s20  ;;  %p1675_p7 = scmp.lt.s32.totalorder %s1669_s20, %s1669_s20 }
  0x14   :  { %p1676_p8 = por %p1675_p7, %p1674_p6 }
  0x16   :  { %p1677_p9 = pnand %p1676_p8, %p1670_p5 }
  0x18   :  { %1680 = shalt.err (!%p1677_p9)
}
  0x19   :  { %27 = dma.hbm_to_vmem [thread:$0]  %s2060_s0, 128, %s25_s17, [#allocation3]  }
  0x1a   :  { %s1689_s23 = scalar_lea.vmem %s50_s19, 512  ;;  %p1694_p11 = scmp.lt.s32.totalorder %s50_s19, %s50_s19 }
  0x1b   :  { %p1690_p10 = scmp.ne.s32.totalorder %s50_s19, %s1689_s23  ;;  %p1695_p12 = scmp.lt.s32.totalorder %s1689_s23, %s1689_s23 }
  0x1d   :  { %p1696_p13 = por %p1695_p12, %p1694_p11 }
  0x1f   :  { %p1697_p0 = pnand %p1696_p13, %p1690_p10 }
  0x21   :  { %1700 = shalt.err (!%p1697_p0)
}
  0x22   :  { %55 = dma.hbm_to_vmem [thread:$0]  %s2064_s4, 512, %s50_s19, [#allocation6], %s1750_s12, %s1750_s12, %s1751_s13  }
  0x23   :  { %s1754_s25 = smov [#allocation8]  }
  0x24   :  { %s63_s26 = sshll.u32 %s1754_s25, 4  ;;  %s64_s26 = int_to_ptr.vmem [resolvable:$true] %s63_s26 }
  0x25   :  { %s1709_s27 = scalar_lea.vmem %s64_s26, 512  ;;  %p1714_p2 = scmp.lt.s32.totalorder %s64_s26, %s64_s26 }
  0x26   :  { %p1710_p1 = scmp.ne.s32.totalorder %s64_s26, %s1709_s27  ;;  %p1715_p3 = scmp.lt.s32.totalorder %s1709_s27, %s1709_s27 }
  0x28   :  { %p1716_p4 = por %p1715_p3, %p1714_p2 }
  0x2a   :  { %p1717_p5 = pnand %p1716_p4, %p1710_p1 }
  0x2c   :  { %1720 = shalt.err (!%p1717_p5)
}
  0x2d   :  { %69 = dma.hbm_to_vmem [thread:$0]  %s2066_s6, 512, %s64_s26, [#allocation9], %s1750_s12, %s1750_s12, %s1751_s13  }
  0x2e   :  { %1741 = dma.done.wait [#allocation3], 128  }
  0x2f   :  { %1742 = vsyncadd [#allocation3], 4294967168 }
  0x30   :  { %1743 = dma.done.wait [#allocation6], 768  }
  0x31   :  { %1744 = vsyncadd [#allocation6], 4294966528 }
  0x32   :  { %1745 = dma.done.wait [#allocation9], 512  }
  0x33   :  { %1746 = vsyncadd [#allocation9], 4294966784  ;;  %v1755_v0 = vmov 0.0   ;;  %vm1756_vm0 = vmmov 0   ;;  %v88_v1 = vld [vmem:[#allocation5 + $0x8] sm:$0xff]  ;;  %v1840_v2 = vld [vmem:[%s2062_s2 + $0x18] sm:$0xff]  ;;  %v174_v18 = vlaneseq }
  0x34   :  { %1428 = vmatprep.subr.mxu0 %v1755_v0  ;;  %1435 = vmatprep.subr.mxu1 %v1755_v0  ;;  %v87_v3 = vld [vmem:[#allocation5] sm:$0xff]  ;;  %v1846_v4 = vld [vmem:[%s2062_s2 + $0x10] sm:$0xff]  ;;  %v86_v5 = vld [vmem:[#allocation2] sm:$0xff]  ;;  %vm96_vm1 = vcmask 130048   ;;  %s1758_s15 = smov 32   ;;  %vm179_vm5 = vcmask 261120  }
  0x35   :  { %1432 = vmatprep.mubr.msk.f32.mxu0 %vm1756_vm0, %v1755_v0  ;;  %1443 = vmatprep.mubr.msk.f32.mxu1 %vm1756_vm0, %v1755_v0  ;;  %v1853_v6 = vld [vmem:[%s2062_s2 + $0x8] sm:$0xff]  ;;  %v1860_v7 = vld [vmem:[%s2062_s2] sm:$0xff]  ;;  %v175_v19 = vand.u32 127, %v174_v18  ;;  %vm1034_vm6 = vcmask 1040384   ;;  %vm1036_vm7 = vcmask 1041408   ;;  %vm1038_vm8 = vcmask 1042432  }
  0x36   :  { %1429 = vmatpush3.msra.mxu0 %v88_v1  ;;  %1436 = vmatpush3.msra.mxu1 %v1840_v2  ;;  %v1349_v8 = vld [vmem:[%s2063_s3] ss:$0 sm:$0xff]  ;;  %s1757_s3 = smov 64   ;;  %vm1040_vm9 = vcmask 1043456   ;;  %vm1042_vm10 = vcmask 1044480   ;;  %vm1044_vm11 = vcmask 1045504  }
  0x37   :  { %1430 = vmatprep.subr.mxu0 %v1755_v0  ;;  %1437 = vmatprep.subr.mxu1 %v1755_v0  ;;  %vm176_vm2 = vcmp.ge.s32.totalorder %v175_v19, 64  ;;  %vm177_vm3 = vcmp.lt.s32.totalorder %v175_v19, 96  ;;  %v1048_v20 = vld [vmem:[#allocation7] sm:$0xff]  ;;  %vm1046_vm12 = vcmask 1046528   ;;  %vm1318_vm13 = vcmask 24576   ;;  %s1759_s25 = smov [#allocation10]  }
  0x38   :  { %1431 = vmatpush3.msra.mxu0 %v87_v3  ;;  %1438 = vmatpush3.msra.mxu1 %v1846_v4  ;;  %vm1894_vm4 = vmand %vm176_vm2, %vm177_vm3 }
  0x39   :  { %1433 = vmatmul.mubr.msk.f32.vlgmr.msra.gmra.mxu0 %vm96_vm1, %v86_v5  ;;  %1439 = vmatprep.subr.mxu1 %v1755_v0 }
  0x3a   :  { %1440 = vmatpush3.msra.mxu1 %v1853_v6  ;;  %1446 = vmatprep.subr.mxu0 %v1755_v0 }
  0x3b   :  { %1441 = vmatprep.subr.mxu1 %v1755_v0  ;;  %1447 = vmatpush3.msra.mxu0 %v1840_v2 }
  0x3c   :  { %1442 = vmatpush3.msra.mxu1 %v1860_v7  ;;  %1448 = vmatprep.subr.mxu0 %v1755_v0 }
  0x3d   :  { %1444 = vmatmul.mubr.f32.vlgmr.msra.gmra.mxu1 %v1755_v0  ;;  %1449 = vmatpush3.msra.mxu0 %v1846_v4 }
  0x3e   :  { %1450 = vmatprep.subr.mxu0 %v1755_v0  ;;  %1454 = vmatprep.mubr.msk.f32.mxu0 %vm1756_vm0, %v1755_v0 }
  0x3f   :  { %1451 = vmatpush3.msra.mxu0 %v1853_v6  ;;  %1457 = vmatprep.subr.mxu1 %v1755_v0 }
  0x40   :  { %1452 = vmatprep.subr.mxu0 %v1755_v0  ;;  %1458 = vmatpush3.msra.mxu1 %v1840_v2 }
  0x41   :  { %1453 = vmatpush3.msra.mxu0 %v1860_v7  ;;  %1459 = vmatprep.subr.mxu1 %v1755_v0 }
  0x42   :  { %1460 = vmatpush3.msra.mxu1 %v1846_v4  ;;  %1465 = vmatprep.mubr.msk.f32.mxu1 %vm1756_vm0, %v1755_v0 }
  0x43   :  { %1461 = vmatprep.subr.mxu1 %v1755_v0  ;;  %1468 = vmatprep.subr.mxu0 %v1755_v0 }
  0x44   :  { %1462 = vmatpush3.msra.mxu1 %v1853_v6 }
  0x45   :  { %1463 = vmatprep.subr.mxu1 %v1755_v0 }
  0x46   :  { %1464 = vmatpush3.msra.mxu1 %v1860_v7 }
  0x47   :  { %1479 = vmatprep.subr.mxu1 %v1755_v0 }
  0xf9   :  { %v166_v9 = vpop.f32.mrf.mxu0 }
  0xfa   :  { %v1891_v10 = vadd.f32 %v1349_v8, %v166_v9 }
  0xfb   :  { %v1434_v11 = vpop.f32.mrf.mxu0 }
  0xfd   :  { %v249_v12 = vpop.f32.mrf.mxu1 }
  0xfe   :  { %v253_v13 = vadd.f32 %v249_v12, %v1891_v10 }
  0xff   :  { %v1445_v14 = vpop.f32.mrf.mxu1 }
 0x100   :  { %v1351_v15 = vmul.f32 -1.442695, %v253_v13 }
 0x102   :  { %1567 = vpow2.f32 %v1351_v15 }
 0x103   :  { %1569 = vtanh.f32 %v253_v13 }
 0x10f   :  { %v1568_v16 = vpop.eup %1567 }
 0x110   :  { %v258_v17 = vadd.f32 1.0, %v1568_v16  ;;  %v1570_v21 = vpop.eup %1569 }
 0x112   :  { %1571 = vrcp.f32 %v258_v17 }
 0x11f   :  { %v1572_v22 = vpop.eup %1571 }
 0x120   :  { %v261_v23 = vsel %vm1894_vm4, %v1570_v21, %v1572_v22 }
 0x121   :  { %264 = vrot.lane.b32.xlu0 %v261_v23, %s1757_s3  ;;  %v262_v26 = vmul.f32 0.0, %v261_v23 }
 0x193   :  { %v265_v24 = vpop.permute.xlu0 %264 }
 0x194   :  { %v267_v25 = vmul.f32 %v265_v24, %v261_v23 }
 0x196   :  { %269 = vrot.lane.b32.xlu0 %v267_v25, %s1758_s15 }
 0x208   :  { %v270_v27 = vpop.permute.xlu0 %269 }
 0x209   :  { %v272_v28 = vadd.f32 %v270_v27, %v262_v26 }
 0x20b   :  { %1573 = vtanh.f32 %v272_v28  ;;  %v367_v45 = vrot.slane %v272_v28, 7 }
 0x218   :  { %v1574_v29 = vpop.eup %1573 }
 0x219   :  { %275 = vrot.lane.b32.xlu1 %v1574_v29, %s1757_s3 }
 0x28b   :  { %v276_v30 = vpop.permute.xlu1 %275 }
 0x28c   :  { %v1903_v31 = vmul.f32 %v276_v30, %v261_v23 }
 0x28e   :  { %280 = vrot.lane.b32.xlu1 %v1903_v31, %s1758_s15 }
 0x300   :  { %v281_v32 = vpop.permute.xlu1 %280 }
 0x301   :  { %1455 = vmatmul.mubr.msk.f32.vlgmr.msra.gmra.mxu0 %vm179_vm5, %v281_v32 }
 0x302   :  { %1469 = vmatpush3.msra.mxu0 %v1840_v2  ;;  %1476 = vmatprep.mubr.msk.f32.mxu0 %vm1756_vm0, %v1755_v0 }
 0x303   :  { %1470 = vmatprep.subr.mxu0 %v1755_v0 }
 0x304   :  { %1471 = vmatpush3.msra.mxu0 %v1846_v4 }
 0x305   :  { %1472 = vmatprep.subr.mxu0 %v1755_v0 }
 0x306   :  { %1473 = vmatpush3.msra.mxu0 %v1853_v6 }
 0x307   :  { %1474 = vmatprep.subr.mxu0 %v1755_v0 }
 0x308   :  { %1475 = vmatpush3.msra.mxu0 %v1860_v7 }
 0x309   :  { %1490 = vmatprep.subr.mxu0 %v1755_v0 }
 0x3c1   :  { %v350_v33 = vpop.f32.mrf.mxu0 }
 0x3c2   :  { %v355_v34 = vrot.slane %v350_v33, 7 }
 0x3c3   :  { %v1456_v35 = vpop.f32.mrf.mxu0 }
 0x3c4   :  { %v357_v36 = vadd.f32 %v355_v34, %v1891_v10 }
 0x3c6   :  { %v1353_v37 = vmul.f32 -1.442695, %v357_v36 }
 0x3c8   :  { %1575 = vpow2.f32 %v1353_v37 }
 0x3c9   :  { %1577 = vtanh.f32 %v357_v36 }
 0x3d5   :  { %v1576_v38 = vpop.eup %1575 }
 0x3d6   :  { %v362_v39 = vadd.f32 1.0, %v1576_v38  ;;  %v1578_v40 = vpop.eup %1577 }
 0x3d8   :  { %1579 = vrcp.f32 %v362_v39 }
 0x3e5   :  { %v1580_v41 = vpop.eup %1579 }
 0x3e6   :  { %v365_v42 = vsel %vm1894_vm4, %v1578_v40, %v1580_v41 }
 0x3e7   :  { %371 = vrot.lane.b32.xlu0 %v365_v42, %s1757_s3  ;;  %v369_v46 = vmul.f32 %v367_v45, %v365_v42 }
 0x459   :  { %v372_v43 = vpop.permute.xlu0 %371 }
 0x45a   :  { %v374_v44 = vmul.f32 %v372_v43, %v365_v42 }
 0x45c   :  { %376 = vrot.lane.b32.xlu1 %v374_v44, %s1758_s15 }
 0x4ce   :  { %v377_v47 = vpop.permute.xlu1 %376 }
 0x4cf   :  { %v379_v48 = vadd.f32 %v377_v47, %v369_v46 }
 0x4d1   :  { %1581 = vtanh.f32 %v379_v48  ;;  %v475_v5 = vrot.slane %v379_v48, 7 }
 0x4de   :  { %v1582_v49 = vpop.eup %1581 }
 0x4df   :  { %382 = vrot.lane.b32.xlu0 %v1582_v49, %s1757_s3 }
 0x551   :  { %v383_v50 = vpop.permute.xlu0 %382 }
 0x552   :  { %v385_v51 = vmul.f32 %v383_v50, %v365_v42 }
 0x554   :  { %v387_v52 = vrot.slane %v385_v51, 1  ;;  %v1035_v15 = vsel %vm1034_vm6, %v1903_v31, %v385_v51 }
 0x556   :  { %388 = vrot.lane.b32.xlu1 %v387_v52, %s1758_s15 }
 0x5c8   :  { %v389_v53 = vpop.permute.xlu1 %388 }
 0x5c9   :  { %1466 = vmatmul.mubr.msk.f32.vlgmr.msra.gmra.mxu1 %vm179_vm5, %v389_v53 }
 0x5ca   :  { %1480 = vmatpush3.msra.mxu1 %v1840_v2  ;;  %1487 = vmatprep.mubr.msk.f32.mxu1 %vm1756_vm0, %v1755_v0 }
 0x5cb   :  { %1481 = vmatprep.subr.mxu1 %v1755_v0 }
 0x5cc   :  { %1482 = vmatpush3.msra.mxu1 %v1846_v4 }
 0x5cd   :  { %1483 = vmatprep.subr.mxu1 %v1755_v0 }
 0x5ce   :  { %1484 = vmatpush3.msra.mxu1 %v1853_v6 }
 0x5cf   :  { %1485 = vmatprep.subr.mxu1 %v1755_v0 }
 0x5d0   :  { %1486 = vmatpush3.msra.mxu1 %v1860_v7 }
 0x5d1   :  { %1501 = vmatprep.subr.mxu1 %v1755_v0 }
 0x689   :  { %v458_v54 = vpop.f32.mrf.mxu1 }
 0x68a   :  { %v463_v55 = vrot.slane %v458_v54, 6 }
 0x68b   :  { %v1467_v56 = vpop.f32.mrf.mxu1 }
 0x68c   :  { %v465_v57 = vadd.f32 %v463_v55, %v1891_v10 }
 0x68e   :  { %v1355_v58 = vmul.f32 -1.442695, %v465_v57 }
 0x690   :  { %1583 = vpow2.f32 %v1355_v58 }
 0x691   :  { %1585 = vtanh.f32 %v465_v57 }
 0x69d   :  { %v1584_v59 = vpop.eup %1583 }
 0x69e   :  { %v470_v60 = vadd.f32 1.0, %v1584_v59  ;;  %v1586_v61 = vpop.eup %1585 }
 0x6a0   :  { %1587 = vrcp.f32 %v470_v60 }
 0x6ad   :  { %v1588_v62 = vpop.eup %1587 }
 0x6ae   :  { %v473_v63 = vsel %vm1894_vm4, %v1586_v61, %v1588_v62 }
 0x6af   :  { %479 = vrot.lane.b32.xlu0 %v473_v63, %s1757_s3  ;;  %v477_v8 = vmul.f32 %v475_v5, %v473_v63 }
 0x721   :  { %v480_v1 = vpop.permute.xlu0 %479 }
 0x722   :  { %v482_v3 = vmul.f32 %v480_v1, %v473_v63 }
 0x724   :  { %484 = vrot.lane.b32.xlu1 %v482_v3, %s1758_s15 }
 0x796   :  { %v485_v9 = vpop.permute.xlu1 %484 }
 0x797   :  { %v487_v11 = vadd.f32 %v485_v9, %v477_v8 }
 0x799   :  { %1589 = vtanh.f32 %v487_v11  ;;  %v583_v32 = vrot.slane %v487_v11, 7 }
 0x7a6   :  { %v1590_v12 = vpop.eup %1589 }
 0x7a7   :  { %490 = vrot.lane.b32.xlu0 %v1590_v12, %s1757_s3 }
 0x819   :  { %v491_v13 = vpop.permute.xlu0 %490 }
 0x81a   :  { %v493_v14 = vmul.f32 %v491_v13, %v473_v63 }
 0x81c   :  { %v495_v16 = vrot.slane %v493_v14, 2  ;;  %v1037_v17 = vsel %vm1036_vm7, %v1035_v15, %v493_v14 }
 0x81e   :  { %496 = vrot.lane.b32.xlu1 %v495_v16, %s1758_s15 }
 0x890   :  { %v497_v18 = vpop.permute.xlu1 %496 }
 0x891   :  { %1477 = vmatmul.mubr.msk.f32.vlgmr.msra.gmra.mxu0 %vm179_vm5, %v497_v18 }
 0x892   :  { %1491 = vmatpush3.msra.mxu0 %v1840_v2  ;;  %1498 = vmatprep.mubr.msk.f32.mxu0 %vm1756_vm0, %v1755_v0 }
 0x893   :  { %1492 = vmatprep.subr.mxu0 %v1755_v0 }
 0x894   :  { %1493 = vmatpush3.msra.mxu0 %v1846_v4 }
 0x895   :  { %1494 = vmatprep.subr.mxu0 %v1755_v0 }
 0x896   :  { %1495 = vmatpush3.msra.mxu0 %v1853_v6 }
 0x897   :  { %1496 = vmatprep.subr.mxu0 %v1755_v0 }
 0x898   :  { %1497 = vmatpush3.msra.mxu0 %v1860_v7 }
 0x899   :  { %1512 = vmatprep.subr.mxu0 %v1755_v0 }
 0x951   :  { %v566_v19 = vpop.f32.mrf.mxu0 }
 0x952   :  { %v571_v21 = vrot.slane %v566_v19, 5 }
 0x953   :  { %v1478_v22 = vpop.f32.mrf.mxu0 }
 0x954   :  { %v573_v23 = vadd.f32 %v571_v21, %v1891_v10 }
 0x956   :  { %v1357_v24 = vmul.f32 -1.442695, %v573_v23 }
 0x958   :  { %1591 = vpow2.f32 %v1357_v24 }
 0x959   :  { %1593 = vtanh.f32 %v573_v23 }
 0x965   :  { %v1592_v25 = vpop.eup %1591 }
 0x966   :  { %v578_v26 = vadd.f32 1.0, %v1592_v25  ;;  %v1594_v27 = vpop.eup %1593 }
 0x968   :  { %1595 = vrcp.f32 %v578_v26 }
 0x975   :  { %v1596_v28 = vpop.eup %1595 }
 0x976   :  { %v581_v29 = vsel %vm1894_vm4, %v1594_v27, %v1596_v28 }
 0x977   :  { %587 = vrot.lane.b32.xlu0 %v581_v29, %s1757_s3  ;;  %v585_v33 = vmul.f32 %v583_v32, %v581_v29 }
 0x9e9   :  { %v588_v30 = vpop.permute.xlu0 %587 }
 0x9ea   :  { %v590_v31 = vmul.f32 %v588_v30, %v581_v29 }
 0x9ec   :  { %592 = vrot.lane.b32.xlu1 %v590_v31, %s1758_s15 }
 0xa5e   :  { %v593_v34 = vpop.permute.xlu1 %592 }
 0xa5f   :  { %v595_v35 = vadd.f32 %v593_v34, %v585_v33 }
 0xa61   :  { %1597 = vtanh.f32 %v595_v35  ;;  %v691_v54 = vrot.slane %v595_v35, 7 }
 0xa6e   :  { %v1598_v36 = vpop.eup %1597 }
 0xa6f   :  { %598 = vrot.lane.b32.xlu0 %v1598_v36, %s1757_s3 }
 0xae1   :  { %v599_v37 = vpop.permute.xlu0 %598 }
 0xae2   :  { %v601_v38 = vmul.f32 %v599_v37, %v581_v29 }
 0xae4   :  { %v603_v39 = vrot.slane %v601_v38, 3  ;;  %v1039_v40 = vsel %vm1038_vm8, %v1037_v17, %v601_v38 }
 0xae6   :  { %604 = vrot.lane.b32.xlu1 %v603_v39, %s1758_s15 }
 0xb58   :  { %v605_v41 = vpop.permute.xlu1 %604 }
 0xb59   :  { %1488 = vmatmul.mubr.msk.f32.vlgmr.msra.gmra.mxu1 %vm179_vm5, %v605_v41 }
 0xb5a   :  { %1502 = vmatpush3.msra.mxu1 %v1840_v2  ;;  %1509 = vmatprep.mubr.msk.f32.mxu1 %vm1756_vm0, %v1755_v0 }
 0xb5b   :  { %1503 = vmatprep.subr.mxu1 %v1755_v0 }
 0xb5c   :  { %1504 = vmatpush3.msra.mxu1 %v1846_v4 }
 0xb5d   :  { %1505 = vmatprep.subr.mxu1 %v1755_v0 }
 0xb5e   :  { %1506 = vmatpush3.msra.mxu1 %v1853_v6 }
 0xb5f   :  { %1507 = vmatprep.subr.mxu1 %v1755_v0 }
 0xb60   :  { %1508 = vmatpush3.msra.mxu1 %v1860_v7 }
 0xb61   :  { %1523 = vmatprep.subr.mxu1 %v1755_v0 }
 0xc19   :  { %v674_v42 = vpop.f32.mrf.mxu1 }
 0xc1a   :  { %v679_v43 = vrot.slane %v674_v42, 4 }
 0xc1b   :  { %v1489_v44 = vpop.f32.mrf.mxu1 }
 0xc1c   :  { %v681_v45 = vadd.f32 %v679_v43, %v1891_v10 }
 0xc1e   :  { %v1359_v46 = vmul.f32 -1.442695, %v681_v45 }
 0xc20   :  { %1599 = vpow2.f32 %v1359_v46 }
 0xc21   :  { %1601 = vtanh.f32 %v681_v45 }
 0xc2d   :  { %v1600_v47 = vpop.eup %1599 }
 0xc2e   :  { %v686_v48 = vadd.f32 1.0, %v1600_v47  ;;  %v1602_v49 = vpop.eup %1601 }
 0xc30   :  { %1603 = vrcp.f32 %v686_v48 }
 0xc3d   :  { %v1604_v50 = vpop.eup %1603 }
 0xc3e   :  { %v689_v51 = vsel %vm1894_vm4, %v1602_v49, %v1604_v50 }
 0xc3f   :  { %695 = vrot.lane.b32.xlu0 %v689_v51, %s1757_s3  ;;  %v693_v55 = vmul.f32 %v691_v54, %v689_v51 }
 0xcb1   :  { %v696_v52 = vpop.permute.xlu0 %695 }
 0xcb2   :  { %v698_v53 = vmul.f32 %v696_v52, %v689_v51 }
 0xcb4   :  { %700 = vrot.lane.b32.xlu1 %v698_v53, %s1758_s15 }
 0xd26   :  { %v701_v56 = vpop.permute.xlu1 %700 }
 0xd27   :  { %v703_v57 = vadd.f32 %v701_v56, %v693_v55 }
 0xd29   :  { %1605 = vtanh.f32 %v703_v57  ;;  %v799_v14 = vrot.slane %v703_v57, 7 }
 0xd36   :  { %v1606_v58 = vpop.eup %1605 }
 0xd37   :  { %706 = vrot.lane.b32.xlu0 %v1606_v58, %s1757_s3 }
 0xda9   :  { %v707_v59 = vpop.permute.xlu0 %706 }
 0xdaa   :  { %v709_v60 = vmul.f32 %v707_v59, %v689_v51 }
 0xdac   :  { %v711_v61 = vrot.slane %v709_v60, 4  ;;  %v1041_v62 = vsel %vm1040_vm9, %v1039_v40, %v709_v60 }
 0xdae   :  { %712 = vrot.lane.b32.xlu1 %v711_v61, %s1758_s15 }
 0xe20   :  { %v713_v63 = vpop.permute.xlu1 %712 }
 0xe21   :  { %1499 = vmatmul.mubr.msk.f32.vlgmr.msra.gmra.mxu0 %vm179_vm5, %v713_v63  ;;  %v1050_v63 = vld [vmem:[#allocation7 + $0x10] sm:$0xff] }
 0xe22   :  { %1513 = vmatpush3.msra.mxu0 %v1840_v2  ;;  %1520 = vmatprep.mubr.msk.f32.mxu0 %vm1756_vm0, %v1755_v0 }
 0xe23   :  { %1514 = vmatprep.subr.mxu0 %v1755_v0 }
 0xe24   :  { %1515 = vmatpush3.msra.mxu0 %v1846_v4 }
 0xe25   :  { %1516 = vmatprep.subr.mxu0 %v1755_v0 }
 0xe26   :  { %1517 = vmatpush3.msra.mxu0 %v1853_v6 }
 0xe27   :  { %1518 = vmatprep.subr.mxu0 %v1755_v0 }
 0xe28   :  { %1519 = vmatpush3.msra.mxu0 %v1860_v7 }
 0xe29   :  { %1534 = vmatprep.subr.mxu0 %v1755_v0 }
 0xee1   :  { %v782_v1 = vpop.f32.mrf.mxu0 }
 0xee2   :  { %v787_v3 = vrot.slane %v782_v1, 3  ;;  %v1049_v1 = vld [vmem:[#allocation7 + $0x8] sm:$0xff] }
 0xee3   :  { %v1500_v2 = vpop.f32.mrf.mxu0 }
 0xee4   :  { %v789_v5 = vadd.f32 %v787_v3, %v1891_v10 }
 0xee6   :  { %v1361_v8 = vmul.f32 -1.442695, %v789_v5 }
 0xee8   :  { %1607 = vpow2.f32 %v1361_v8 }
 0xee9   :  { %1609 = vtanh.f32 %v789_v5 }
 0xef5   :  { %v1608_v9 = vpop.eup %1607 }
 0xef6   :  { %v794_v11 = vadd.f32 1.0, %v1608_v9  ;;  %v1610_v4 = vpop.eup %1609 }
 0xef8   :  { %1611 = vrcp.f32 %v794_v11  ;;  %v1138_v11 = vld [vmem:[#allocation8 + $0x18] sm:$0xff] }
 0xf05   :  { %v1612_v12 = vpop.eup %1611 }
 0xf06   :  { %v797_v6 = vsel %vm1894_vm4, %v1610_v4, %v1612_v12  ;;  %v1137_v4 = vld [vmem:[#allocation8 + $0x10] sm:$0xff]  ;;  %v1136_v12 = vld [vmem:[#allocation8 + $0x8] sm:$0xff] }
 0xf07   :  { %803 = vrot.lane.b32.xlu0 %v797_v6, %s1757_s3  ;;  %v801_v15 = vmul.f32 %v799_v14, %v797_v6 }
 0xf79   :  { %v804_v7 = vpop.permute.xlu0 %803 }
 0xf7a   :  { %v806_v13 = vmul.f32 %v804_v7, %v797_v6  ;;  %v1366_v7 = vld [vmem:[%s2065_s5] ss:$0 sm:$0xff] }
 0xf7c   :  { %808 = vrot.lane.b32.xlu1 %v806_v13, %s1758_s15 }
 0xfee   :  { %v809_v16 = vpop.permute.xlu1 %808 }
 0xfef   :  { %v811_v17 = vadd.f32 %v809_v16, %v801_v15 }
 0xff1   :  { %1613 = vtanh.f32 %v811_v17  ;;  %v907_v37 = vrot.slane %v811_v17, 7  ;;  %v1243_v17 = vld [vmem:[%s2067_s7 + $0x18] sm:$0xff] }
 0xffe   :  { %v1614_v18 = vpop.eup %1613 }
 0xfff   :  { %814 = vrot.lane.b32.xlu0 %v1614_v18, %s1757_s3  ;;  %v1242_v18 = vld [vmem:[%s2067_s7 + $0x10] sm:$0xff] }
0x1071   :  { %v815_v19 = vpop.permute.xlu0 %814 }
0x1072   :  { %v817_v21 = vmul.f32 %v815_v19, %v797_v6  ;;  %v1135_v6 = vld [vmem:[#allocation8] sm:$0xff]  ;;  %v1241_v19 = vld [vmem:[%s2067_s7 + $0x8] sm:$0xff] }
0x1074   :  { %v819_v22 = vrot.slane %v817_v21, 5  ;;  %v1043_v23 = vsel %vm1042_vm10, %v1041_v62, %v817_v21  ;;  %v1051_v62 = vld [vmem:[#allocation7 + $0x18] sm:$0xff]  ;;  %v1240_v21 = vld [vmem:[%s2067_s7] sm:$0xff] }
0x1076   :  { %820 = vrot.lane.b32.xlu1 %v819_v22, %s1758_s15 }
0x10e8   :  { %v821_v24 = vpop.permute.xlu1 %820 }
0x10e9   :  { %1510 = vmatmul.mubr.msk.f32.vlgmr.msra.gmra.mxu1 %vm179_vm5, %v821_v24 }
0x10ea   :  { %1531 = vmatprep.mubr.msk.f32.mxu1 %vm1756_vm0, %v1755_v0  ;;  %1524 = vmatpush3.msra.mxu1 %v1051_v62 }
0x10eb   :  { %1525 = vmatprep.subr.mxu1 %v1755_v0 }
0x10ec   :  { %1526 = vmatpush3.msra.mxu1 %v1050_v63 }
0x10ed   :  { %1527 = vmatprep.subr.mxu1 %v1755_v0 }
0x10ee   :  { %1528 = vmatpush3.msra.mxu1 %v1049_v1 }
0x10ef   :  { %1529 = vmatprep.subr.mxu1 %v1755_v0 }
0x10f0   :  { %1530 = vmatpush3.msra.mxu1 %v1048_v20 }
0x10f1   :  { %1545 = vmatprep.subr.mxu1 %v1755_v0 }
0x11a9   :  { %v890_v25 = vpop.f32.mrf.mxu1 }
0x11aa   :  { %v895_v26 = vrot.slane %v890_v25, 2 }
0x11ab   :  { %v1511_v27 = vpop.f32.mrf.mxu1 }
0x11ac   :  { %v897_v28 = vadd.f32 %v895_v26, %v1891_v10 }
0x11ae   :  { %v1363_v29 = vmul.f32 -1.442695, %v897_v28 }
0x11b0   :  { %1615 = vpow2.f32 %v1363_v29 }
0x11b1   :  { %1617 = vtanh.f32 %v897_v28 }
0x11bd   :  { %v1616_v30 = vpop.eup %1615 }
0x11be   :  { %v902_v31 = vadd.f32 1.0, %v1616_v30  ;;  %v1618_v32 = vpop.eup %1617 }
0x11c0   :  { %1619 = vrcp.f32 %v902_v31 }
0x11cd   :  { %v1620_v33 = vpop.eup %1619 }
0x11ce   :  { %v905_v34 = vsel %vm1894_vm4, %v1618_v32, %v1620_v33 }
0x11cf   :  { %911 = vrot.lane.b32.xlu0 %v905_v34, %s1757_s3  ;;  %v909_v38 = vmul.f32 %v907_v37, %v905_v34 }
0x1241   :  { %v912_v35 = vpop.permute.xlu0 %911 }
0x1242   :  { %v914_v36 = vmul.f32 %v912_v35, %v905_v34 }
0x1244   :  { %916 = vrot.lane.b32.xlu1 %v914_v36, %s1758_s15 }
0x12b6   :  { %v917_v39 = vpop.permute.xlu1 %916 }
0x12b7   :  { %v919_v40 = vadd.f32 %v917_v39, %v909_v38 }
0x12b9   :  { %1621 = vtanh.f32 %v919_v40  ;;  %v1015_v59 = vrot.slane %v919_v40, 7 }
0x12c6   :  { %v1622_v41 = vpop.eup %1621 }
0x12c7   :  { %922 = vrot.lane.b32.xlu0 %v1622_v41, %s1757_s3 }
0x1339   :  { %v923_v42 = vpop.permute.xlu0 %922 }
0x133a   :  { %v925_v43 = vmul.f32 %v923_v42, %v905_v34 }
0x133c   :  { %v927_v44 = vrot.slane %v925_v43, 6  ;;  %v1045_v45 = vsel %vm1044_vm11, %v1043_v23, %v925_v43 }
0x133e   :  { %928 = vrot.lane.b32.xlu1 %v927_v44, %s1758_s15 }
0x13b0   :  { %v929_v46 = vpop.permute.xlu1 %928 }
0x13b1   :  { %1521 = vmatmul.mubr.msk.f32.vlgmr.msra.gmra.mxu0 %vm179_vm5, %v929_v46 }
0x13b2   :  { %1542 = vmatprep.mubr.msk.f32.mxu0 %vm1756_vm0, %v1755_v0  ;;  %1535 = vmatpush3.msra.mxu0 %v1138_v11 }
0x13b3   :  { %1536 = vmatprep.subr.mxu0 %v1755_v0 }
0x13b4   :  { %1537 = vmatpush3.msra.mxu0 %v1137_v4 }
0x13b5   :  { %1538 = vmatprep.subr.mxu0 %v1755_v0 }
0x13b6   :  { %1539 = vmatpush3.msra.mxu0 %v1136_v12 }
0x13b7   :  { %1540 = vmatprep.subr.mxu0 %v1755_v0 }
0x13b8   :  { %1541 = vmatpush3.msra.mxu0 %v1135_v6 }
0x1471   :  { %v998_v47 = vpop.f32.mrf.mxu0 }
0x1472   :  { %v1003_v48 = vrot.slane %v998_v47, 1 }
0x1473   :  { %v1522_v49 = vpop.f32.mrf.mxu0 }
0x1474   :  { %v1005_v50 = vadd.f32 %v1003_v48, %v1891_v10 }
0x1476   :  { %v1365_v51 = vmul.f32 -1.442695, %v1005_v50 }
0x1478   :  { %1623 = vpow2.f32 %v1365_v51 }
0x1479   :  { %1625 = vtanh.f32 %v1005_v50  ;;  %v1244_v50 = vld [vmem:[%s2068_s8] sm:$0x1]  ;;  %s1338_s8 = sshll.u32 %s1759_s25, 4  ;;  %s1339_s8 = int_to_ptr.vmem [resolvable:$true] %s1338_s8 }
0x147a   :  { %s1721_s26 = scalar_lea.vmem %s1339_s8, 16  ;;  %s1725_s27 = scalar_lea.vmem %s1339_s8, 32 }
0x147b   :  { %p1722_p6 = scmp.ne.s32.totalorder %s1339_s8, %s1721_s26  ;;  %p1726_p7 = scmp.lt.s32.totalorder %s1339_s8, %s1339_s8 }
0x147c   :  { %p1727_p8 = scmp.lt.s32.totalorder %s1725_s27, %s1721_s26 }
0x147e   :  { %p1728_p9 = por %p1727_p8, %p1726_p7 }
0x1480   :  { %p1729_p10 = pnand %p1728_p9, %p1722_p6 }
0x1485   :  { %v1624_v52 = vpop.eup %1623 }
0x1486   :  { %v1010_v53 = vadd.f32 1.0, %v1624_v52  ;;  %v1626_v54 = vpop.eup %1625 }
0x1488   :  { %1627 = vrcp.f32 %v1010_v53 }
0x1495   :  { %v1628_v55 = vpop.eup %1627 }
0x1496   :  { %v1013_v56 = vsel %vm1894_vm4, %v1626_v54, %v1628_v55 }
0x1497   :  { %1019 = vrot.lane.b32.xlu0 %v1013_v56, %s1757_s3  ;;  %v1017_v60 = vmul.f32 %v1015_v59, %v1013_v56 }
0x1509   :  { %v1020_v57 = vpop.permute.xlu0 %1019 }
0x150a   :  { %v1022_v58 = vmul.f32 %v1020_v57, %v1013_v56 }
0x150c   :  { %1024 = vrot.lane.b32.xlu1 %v1022_v58, %s1758_s15 }
0x157e   :  { %v1025_v10 = vpop.permute.xlu1 %1024 }
0x157f   :  { %v1027_v61 = vadd.f32 %v1025_v10, %v1017_v60 }
0x1581   :  { %1629 = vtanh.f32 %v1027_v61 }
0x158e   :  { %v1630_v3 = vpop.eup %1629 }
0x158f   :  { %1030 = vrot.lane.b32.xlu0 %v1630_v3, %s1757_s3 }
0x1601   :  { %v1031_v2 = vpop.permute.xlu0 %1030 }
0x1602   :  { %v1033_v5 = vmul.f32 %v1031_v2, %v1013_v56 }
0x1604   :  { %v1047_v8 = vsel %vm1046_vm12, %v1045_v45, %v1033_v5 }
0x1605   :  { %1060 = vrot.lane.b32.xlu1 %v1047_v8, %s1758_s15 }
0x1677   :  { %v1061_v9 = vpop.permute.xlu1 %1060 }
0x1678   :  { %1532 = vmatmul.mubr.msk.f32.vlgmr.msra.gmra.mxu1 %vm179_vm5, %v1061_v9 }
0x1679   :  { %1553 = vmatprep.mubr.msk.f32.mxu1 %vm1756_vm0, %v1755_v0  ;;  %1546 = vmatpush3.msra.mxu1 %v1243_v17 }
0x167a   :  { %1547 = vmatprep.subr.mxu1 %v1755_v0 }
0x167b   :  { %1548 = vmatpush3.msra.mxu1 %v1242_v18 }
0x167c   :  { %1549 = vmatprep.subr.mxu1 %v1755_v0 }
0x167d   :  { %1550 = vmatpush3.msra.mxu1 %v1241_v19 }
0x167e   :  { %1551 = vmatprep.subr.mxu1 %v1755_v0 }
0x167f   :  { %1552 = vmatpush3.msra.mxu1 %v1240_v21 }
0x1738   :  { %v1130_v13 = vpop.f32.mrf.mxu1 }
0x1739   :  { %v1131_v14 = vadd.f32 %v1366_v7, %v1130_v13 }
0x173a   :  { %v1533_v15 = vpop.f32.mrf.mxu1 }
0x173b   :  { %1631 = vtanh.f32 %v1131_v14 }
0x1748   :  { %v1632_v16 = vpop.eup %1631 }
0x1749   :  { %1543 = vmatmul.mubr.msk.f32.vlgmr.msra.gmra.mxu0 %vm179_vm5, %v1632_v16 }
0x1809   :  { %v1208_v22 = vpop.f32.mrf.mxu0 }
0x180a   :  { %v1212_v23 = vsel %vm179_vm5, %v1208_v22, -inf }
0x180b   :  { %v1213_v24 = vrot.slane %v1212_v23, 4  ;;  %v1544_v25 = vpop.f32.mrf.mxu0 }
0x180d   :  { %v1214_v26 = vmax.f32 %v1212_v23, %v1213_v24 }
0x180f   :  { %v1215_v27 = vrot.slane %v1214_v26, 2 }
0x1811   :  { %v1216_v28 = vmax.f32 %v1214_v26, %v1215_v27 }
0x1813   :  { %v1217_v29 = vrot.slane %v1216_v28, 1 }
0x1815   :  { %v1218_v30 = vmax.f32 %v1216_v28, %v1217_v29 }
0x1817   :  { %v1219_v31 = vsub.f32 %v1208_v22, %v1218_v30 }
0x1819   :  { %v1220_v32 = vmul.f32 1.442695, %v1219_v31 }
0x181b   :  { %1633 = vpow2.f32 %v1220_v32 }
0x1828   :  { %v1634_v33 = vpop.eup %1633 }
0x1829   :  { %v1222_v34 = vsel %vm179_vm5, %v1634_v33, 0.0 }
0x182a   :  { %v1223_v35 = vrot.slane %v1222_v34, 4 }
0x182c   :  { %v1224_v36 = vadd.f32 %v1223_v35, %v1222_v34 }
0x182e   :  { %v1225_v0 = vrot.slane %v1224_v36, 2 }
0x1830   :  { %v1226_v37 = vadd.f32 %v1225_v0, %v1224_v36 }
0x1832   :  { %v1227_v38 = vrot.slane %v1226_v37, 1 }
0x1834   :  { %v1228_v39 = vadd.f32 %v1227_v38, %v1226_v37 }
0x1836   :  { %1635 = vrcp.f32 %v1228_v39 }
0x1843   :  { %v1636_v40 = vpop.eup %1635 }
0x1844   :  { %v1230_v41 = vmul.f32 %v1636_v40, %v1634_v33 }
0x1846   :  { %v1232_v42 = vmul.f32 %v1230_v41, %v1061_v9 }
0x1848   :  { %v1233_v43 = vsel %vm179_vm5, %v1232_v42, 0.0 }
0x1849   :  { %v1234_v44 = vrot.slane %v1233_v43, 4 }
0x184b   :  { %v1235_v45 = vadd.f32 %v1234_v44, %v1233_v43 }
0x184d   :  { %v1236_v46 = vrot.slane %v1235_v45, 2 }
0x184f   :  { %v1237_v47 = vadd.f32 %v1236_v46, %v1235_v45 }
0x1851   :  { %v1238_v48 = vrot.slane %v1237_v47, 1 }
0x1853   :  { %v1239_v49 = vadd.f32 %v1238_v48, %v1237_v47 }
0x1855   :  { %1554 = vmatmul.mubr.msk.f32.vlgmr.msra.gmra.mxu1 %vm179_vm5, %v1239_v49 }
0x1915   :  { %v1314_v51 = vpop.f32.mrf.mxu1 }
0x1916   :  { %v1315_v52 = vadd.f32 %v1314_v51, %v1244_v50 }
0x1917   :  { %v1555_v53 = vpop.f32.mrf.mxu1 }
0x1918   :  { %v1319_v54 = vsel %vm1318_vm13, %v1315_v52, -inf }
0x1919   :  { %1320 = vmax.xlane.f32.xlu0 %v1319_v54 }
0x19a2   :  { %v1321_v55 = vpop.xlane.xlu0 %1320 }
0x19a3   :  { %v1322_v56 = vsub.f32 %v1315_v52, %v1321_v55 }
0x19a5   :  { %v1323_v57 = vmul.f32 1.442695, %v1322_v56 }
0x19a7   :  { %1637 = vpow2.f32 %v1323_v57 }
0x19b4   :  { %v1638_v58 = vpop.eup %1637 }
0x19b5   :  { %v1325_v59 = vsel %vm1318_vm13, %v1638_v58, 0.0 }
0x19b6   :  { %1326 = vadd.xlane.f32.xlu1 %v1325_v59 }
0x1a3f   :  { %v1327_v60 = vpop.xlane.xlu1 %1326 }
0x1a40   :  { %1639 = vlog2.f32 %v1327_v60 }
0x1a4d   :  { %v1640_v10 = vpop.eup %1639 }
0x1a4e   :  { %v1329_v61 = vmul.f32 0.6931472, %v1640_v10 }
0x1a50   :  { %v1330_v62 = vsub.f32 %v1322_v56, %v1329_v61 }
0x1a52   :  { %1331 = vst.msk [vmem:[#allocation10] sm:$0x1] %vm1318_vm13, %v1330_v62 }
0x1a53   :  { %1732 = shalt.err (!%p1729_p10)
}
0x1a54   :  { %1341 = dma.vmem_to_hbm [thread:$0]  %s1339_s8, 16, %s2069_s9, [#allocation4]  }
0x1a55   :  { %1747 = dma.done.wait [#allocation4], 16  }
0x1a56   :  { %1748 = vsyncadd [#allocation4], 4294967280 }
0x1a57   :  { %1345 = vsyncpa [#allocation3], 1 }
0x1a58   :  { %1346 = vsyncpa [#allocation6], 1 }
0x1a59   :  { %1347 = vsyncpa [#allocation9], 1 }
0x1a5a   :  { %1348 = vsyncpa [#allocation4], 1 }

</bundles_post_ra>
